<compile_context>
chip_gen: v6e
topology: v6e:2x2x1
jax: 0.10.0
libtpu: 0.0.40
codegen_flags: <defaults>
</compile_context>

<pallas_src>
import functools
import math

import jax
import jax.numpy as jnp
from jax import lax
from jax.experimental import pallas as pl
from jax.experimental.pallas import tpu as pltpu


def _fourier_pe_kernel(yt_ref, e_ref, xt_ref, w1_ref, b1_ref, w2_ref, b2_ref,
                       out_ref, *, f_half):
    # yt_ref : (F_dim, tile_rows) bf16  -- per-row tables [sin(Ay); cos(Ay)]
    # e_ref  : (tile_rows, tile_n) bf16 -- 0/1 row->position selection matrix
    # xt_ref : (F_dim, tile_n) f32      -- per-position X tables [cos(Ax); sin(Ax)]
    # w1_ref : (H_dim, F_dim) bf16      -- first Linear weight (torch layout)
    # b1_ref : (H_dim, 1) f32
    # w2_ref : (d_model, H_dim) bf16    -- second Linear weight (torch layout)
    # b2_ref : (d_model, 1) f32
    # out_ref: (d_model, tile_n) f32    -- lane-dense tile of positions
    #
    # Expand the per-row Y tables to per-position width with a cheap MXU
    # matmul against the 0/1 selection matrix (exact, f32 result).
    y_exp = jnp.dot(yt_ref[...], e_ref[...],
                    preferred_element_type=jnp.float32)       # (F_dim, tile_n)
    sin_y, cos_y = y_exp[:f_half], y_exp[f_half:]
    xt = xt_ref[...]
    cos_x, sin_x = xt[:f_half], xt[f_half:]

    # Angle addition: sin(Ax+Ay), cos(Ax+Ay). Stacked so the MLP's first
    # layer is a single K = F_dim (=256) contraction.
    ff = jnp.concatenate(
        [sin_y * cos_x + cos_y * sin_x,                         # sin(proj)
         cos_y * cos_x - sin_y * sin_x],                        # cos(proj)
        axis=0).astype(jnp.bfloat16)                            # (F_dim, tile_n)

    h = jnp.dot(w1_ref[...], ff, preferred_element_type=jnp.float32)
    h = jnp.maximum(h + b1_ref[...], 0.0).astype(jnp.bfloat16)  # (H_dim, tile_n)

    out = jnp.dot(w2_ref[...], h, preferred_element_type=jnp.float32)
    out_ref[...] = out + b2_ref[...]                             # (d_model, tile_n)


def _choose_tile_rows(height, width, target_positions=2048):
    """Rows per tile: the tile covers whole image rows and tile_rows*width
    is a multiple of 128 lanes; aim for ~target_positions per tile but keep
    >= 2 grid steps (v7x two-TensorCore split) when the image allows."""
    m = 128 // math.gcd(width, 128)                 # minimal legal row group
    rows = max(m, (target_positions // width) // m * m)
    total = pl.cdiv(height, m) * m                  # height padded to legal multiple
    rows = min(rows, total)
    if total > m and pl.cdiv(total, rows) < 2:
        rows = max(m, pl.cdiv(total, 2 * m) * m)
    return rows


def learnable_fourier_pos_encoding(x, b_param, w1, b1, w2, b2, *,
                                   target_tile=2048):
    """Forward of LearnableFourierPositionalEncoding.

    x       : (B, C, H, W)   -- only the shape is used
    b_param : (M=2, F_dim//2)
    w1, b1  : (H_dim, F_dim), (H_dim,)
    w2, b2  : (d_model, H_dim), (d_model,)
    returns : (B, d_model, H, W) float32
    """
    batch, _, height, width = x.shape
    m_dim, f_half = b_param.shape
    h_dim, f_dim = w1.shape
    d_model = w2.shape[0]
    assert m_dim == 2 and f_dim == 2 * f_half

    tile_rows = _choose_tile_rows(height, width, target_tile)
    tile_n = tile_rows * width                      # multiple of 128 by construction
    h_pad = pl.cdiv(height, tile_rows) * tile_rows  # pad by whole rows, sliced later
    n_tiles = h_pad // tile_rows
    n_pad = h_pad * width
    n = height * width

    # ---- tiny host-side tables (O(F_half*(H+W)) work, already scaled by 2*pi) ----
    two_pi = 2.0 * math.pi
    bp = b_param.astype(jnp.float32)
    xs = jnp.arange(width, dtype=jnp.float32) * (1.0 / max(width - 1, 1))
    ys = jnp.arange(h_pad, dtype=jnp.float32) * (1.0 / max(height - 1, 1))
    ax = two_pi * bp[0][:, None] * xs[None, :]                       # (F_half, W)
    ay = two_pi * bp[1][:, None] * ys[None, :]                       # (F_half, H_pad)
    # X tables pre-tiled to the tile's flattened-position layout: [cosX; sinX].
    xt = jnp.concatenate([jnp.cos(ax), jnp.sin(ax)], axis=0)         # (F_dim, W)
    xt_exp = jnp.tile(xt, (1, tile_rows)).astype(jnp.float32)        # (F_dim, tile_n)
    # Y tables per row: [sinY; cosY], regrouped by row-tile for 3-D blocking.
    yt = jnp.concatenate([jnp.sin(ay), jnp.cos(ay)], axis=0)         # (F_dim, H_pad)
    yt3 = yt.reshape(f_dim, n_tiles, tile_rows).transpose(1, 0, 2)   # (n_tiles, F_dim, tr)
    yt3 = yt3.astype(jnp.bfloat16)
    # 0/1 selection matrix: E[r, j] = 1 iff local position j lies in local row r.
    e_mat = (jnp.arange(tile_n, dtype=jnp.int32)[None, :] // width ==
             jnp.arange(tile_rows, dtype=jnp.int32)[:, None]).astype(jnp.bfloat16)

    w1b = w1.astype(jnp.bfloat16)
    w2b = w2.astype(jnp.bfloat16)
    b1c = b1.astype(jnp.float32).reshape(h_dim, 1)
    b2c = b2.astype(jnp.float32).reshape(d_model, 1)

    kernel = functools.partial(_fourier_pe_kernel, f_half=f_half)

    cost = pl.CostEstimate(
        flops=2 * n_pad * (f_dim * h_dim + h_dim * d_model + f_dim * tile_rows),
        transcendentals=0,
        bytes_accessed=(4 * d_model * n_pad
                        + 4 * f_dim * tile_n
                        + 2 * (tile_rows * tile_n + h_dim * f_dim
                               + d_model * h_dim + f_dim * h_pad)
                        + 4 * (h_dim + d_model)),
    )

    out_t = pl.pallas_call(
        kernel,
        out_shape=jax.ShapeDtypeStruct((d_model, n_pad), jnp.float32),
        grid_spec=pltpu.PrefetchScalarGridSpec(
            num_scalar_prefetch=0,
            grid=(n_tiles,),
            in_specs=[
                pl.BlockSpec((None, f_dim, tile_rows), lambda i: (i, 0, 0)),  # Y tables
                pl.BlockSpec((tile_rows, tile_n), lambda i: (0, 0)),          # E (resident)
                pl.BlockSpec((f_dim, tile_n), lambda i: (0, 0)),              # X tables (resident)
                pl.BlockSpec((h_dim, f_dim), lambda i: (0, 0)),               # W1 (resident)
                pl.BlockSpec((h_dim, 1), lambda i: (0, 0)),                   # b1
                pl.BlockSpec((d_model, h_dim), lambda i: (0, 0)),             # W2 (resident)
                pl.BlockSpec((d_model, 1), lambda i: (0, 0)),                 # b2
            ],
            out_specs=pl.BlockSpec((d_model, tile_n), lambda i: (0, i)),
        ),
        compiler_params=pltpu.CompilerParams(
            dimension_semantics=("parallel",),
            vmem_limit_bytes=48 * 1024 * 1024,
        ),
        cost_estimate=cost,
    )(yt3, e_mat, xt_exp, w1b, b1c, w2b, b2c)

    pos = out_t[:, :n].reshape(1, d_model, height, width)
    # Positional embedding is independent of batch contents.  The broadcast is
    # left to XLA (fuses into the consumer's add in real use).
    return jnp.broadcast_to(pos, (batch, d_model, height, width))


def _reference(x, b_param, w1, b1, w2, b2):
    """Pure-JAX reference implementing the torch forward (HIGHEST precision)."""
    batch, _, height, width = x.shape
    d_model = w2.shape[0]
    xc = jnp.arange(width, dtype=jnp.float32) / (width - 1)
    yc = jnp.arange(height, dtype=jnp.float32) / (height - 1)
    xx = jnp.tile(xc[None, :], (height, 1))
    yy = jnp.tile(yc[:, None], (1, width))
    coords = jnp.stack([xx, yy], axis=-1).reshape(-1, 2)                 # (H*W, 2)
    proj = 2.0 * math.pi * jnp.dot(coords, b_param,
                                   precision=lax.Precision.HIGHEST)      # (H*W, F/2)
    ff = jnp.concatenate([jnp.sin(proj), jnp.cos(proj)], axis=-1)
    h = jax.nn.relu(jnp.dot(ff, w1.T, precision=lax.Precision.HIGHEST) + b1)
    out = jnp.dot(h, w2.T, precision=lax.Precision.HIGHEST) + b2         # (H*W, dm)
    out = out.reshape(height, width, d_model).transpose(2, 0, 1)[None]
    return jnp.broadcast_to(out, (batch, d_model, height, width))


if __name__ == "__main__":
    # Small shapes: d_model=32, defaults G=1, M=2, F_dim=256, H_dim=128.
    d_model = 32
    M, F_dim, H_dim = 2, 256, 128
    gamma = 1.0 / 2.5
    B, C, H, W = 2, 4, 16, 16

    key = jax.random.PRNGKey(0)
    k_b, k_w1, k_b1, k_w2, k_b2, k_x = jax.random.split(key, 6)

    b_param = jax.random.normal(k_b, (M, F_dim // 2), dtype=jnp.float32) * gamma
    lim1 = 1.0 / math.sqrt(F_dim)
    w1 = jax.random.uniform(k_w1, (H_dim, F_dim), jnp.float32, -lim1, lim1)
    b1 = jax.random.uniform(k_b1, (H_dim,), jnp.float32, -lim1, lim1)
    lim2 = 1.0 / math.sqrt(H_dim)
    w2 = jax.random.uniform(k_w2, (d_model, H_dim), jnp.float32, -lim2, lim2)
    b2 = jax.random.uniform(k_b2, (d_model,), jnp.float32, -lim2, lim2)
    x = jax.random.normal(k_x, (B, C, H, W), dtype=jnp.float32)

    out = learnable_fourier_pos_encoding(x, b_param, w1, b1, w2, b2)
    out = jax.block_until_ready(out)

    ref = _reference(x, b_param, w1, b1, w2, b2)
    assert out.shape == (B, d_model, H, W)
    assert out.dtype == jnp.float32
    # bf16 MXU operands (weights / fourier features / hidden) with f32
    # accumulation -> tolerance reflects bf16 operand rounding (~1e-2 scale).
    assert jnp.allclose(out, ref, atol=2.5e-2, rtol=2e-2), \
        f"mismatch vs reference, max err {jnp.max(jnp.abs(out - ref))}"

    print("KERNEL_OK")
</pallas_src>

<mosaic_0001>
module attributes {stable_mosaic.version = 11 : i64} {
  func.func @_fourier_pe_kernel(%arg0: i32, %arg1: memref<1x256x8xbf16, #tpu.memory_space<vmem>>, %arg2: memref<8x128xbf16, #tpu.memory_space<vmem>>, %arg3: memref<256x128xf32, #tpu.memory_space<vmem>>, %arg4: memref<128x256xbf16, #tpu.memory_space<vmem>>, %arg5: memref<128x1xf32, #tpu.memory_space<vmem>>, %arg6: memref<32x128xbf16, #tpu.memory_space<vmem>>, %arg7: memref<32x1xf32, #tpu.memory_space<vmem>>, %arg8: memref<32x128xf32, #tpu.memory_space<vmem>>) attributes {dimension_semantics = [#tpu.dimension_semantics<parallel>], iteration_bounds = array<i64: 2>, scalar_prefetch = 0 : i64, scratch_operands = 0 : i64, tpu.core_type = #tpu.core_type<tc>, window_params = [{transform_indices = @transform_0, window_bounds = array<i64: 1, 256, 8>}, {pipeline_mode = #tpu.pipeline_mode<synchronous>, transform_indices = @transform_1, window_bounds = array<i64: 8, 128>}, {pipeline_mode = #tpu.pipeline_mode<synchronous>, transform_indices = @transform_2, window_bounds = array<i64: 256, 128>}, {pipeline_mode = #tpu.pipeline_mode<synchronous>, transform_indices = @transform_3, window_bounds = array<i64: 128, 256>}, {pipeline_mode = #tpu.pipeline_mode<synchronous>, transform_indices = @transform_4, window_bounds = array<i64: 128, 1>}, {pipeline_mode = #tpu.pipeline_mode<synchronous>, transform_indices = @transform_5, window_bounds = array<i64: 32, 128>}, {pipeline_mode = #tpu.pipeline_mode<synchronous>, transform_indices = @transform_6, window_bounds = array<i64: 32, 1>}, {transform_indices = @transform_7, window_bounds = array<i64: 32, 128>}]} {
    %c0 = arith.constant 0 : index
    %c0_0 = arith.constant 0 : index
    %c0_1 = arith.constant 0 : index
    %0 = vector.load %arg1[%c0, %c0_0, %c0_1] : memref<1x256x8xbf16, #tpu.memory_space<vmem>>, vector<1x256x8xbf16>
    %1 = vector.shape_cast %0 : vector<1x256x8xbf16> to vector<256x8xbf16>
    %c0_2 = arith.constant 0 : index
    %c0_3 = arith.constant 0 : index
    %2 = vector.load %arg2[%c0_2, %c0_3] : memref<8x128xbf16, #tpu.memory_space<vmem>>, vector<8x128xbf16>
    %cst = arith.constant dense<0.000000e+00> : vector<256x128xf32>
    %3 = tpu.matmul %1, %2, %cst {dimension_numbers = #tpu.dot_dimension_numbers<[1], [0], [0], [1], [0, 0, 1, 1], [], []>} : vector<256x8xbf16>, vector<8x128xbf16>, vector<256x128xf32> -> vector<256x128xf32>
    %4 = vector.extract_strided_slice %3 {offsets = [0, 0], sizes = [128, 128], strides = [1, 1]} : vector<256x128xf32> to vector<128x128xf32>
    %5 = vector.extract_strided_slice %3 {offsets = [128, 0], sizes = [128, 128], strides = [1, 1]} : vector<256x128xf32> to vector<128x128xf32>
    %c0_4 = arith.constant 0 : index
    %c0_5 = arith.constant 0 : index
    %6 = vector.load %arg3[%c0_4, %c0_5] : memref<256x128xf32, #tpu.memory_space<vmem>>, vector<256x128xf32>
    %7 = vector.extract_strided_slice %6 {offsets = [0, 0], sizes = [128, 128], strides = [1, 1]} : vector<256x128xf32> to vector<128x128xf32>
    %8 = vector.extract_strided_slice %6 {offsets = [128, 0], sizes = [128, 128], strides = [1, 1]} : vector<256x128xf32> to vector<128x128xf32>
    %9 = arith.mulf %4, %7 : vector<128x128xf32>
    %10 = arith.mulf %5, %8 : vector<128x128xf32>
    %11 = arith.addf %9, %10 : vector<128x128xf32>
    %12 = arith.mulf %5, %7 : vector<128x128xf32>
    %13 = arith.mulf %4, %8 : vector<128x128xf32>
    %14 = arith.subf %12, %13 : vector<128x128xf32>
    %15 = tpu.concatenate %11, %14 in 0 : vector<128x128xf32>, vector<128x128xf32> -> vector<256x128xf32>
    %16 = arith.truncf %15 : vector<256x128xf32> to vector<256x128xbf16>
    %c0_6 = arith.constant 0 : index
    %c0_7 = arith.constant 0 : index
    %17 = vector.load %arg4[%c0_6, %c0_7] : memref<128x256xbf16, #tpu.memory_space<vmem>>, vector<128x256xbf16>
    %cst_8 = arith.constant dense<0.000000e+00> : vector<128x128xf32>
    %18 = tpu.matmul %17, %16, %cst_8 {dimension_numbers = #tpu.dot_dimension_numbers<[1], [0], [0], [1], [0, 0, 1, 1], [], []>} : vector<128x256xbf16>, vector<256x128xbf16>, vector<128x128xf32> -> vector<128x128xf32>
    %c0_9 = arith.constant 0 : index
    %c0_10 = arith.constant 0 : index
    %19 = vector.load %arg5[%c0_9, %c0_10] : memref<128x1xf32, #tpu.memory_space<vmem>>, vector<128x1xf32>
    %20 = vector.broadcast %19 : vector<128x1xf32> to vector<128x128xf32>
    %21 = arith.addf %18, %20 : vector<128x128xf32>
    %cst_11 = arith.constant 0.000000e+00 : f32
    %22 = vector.broadcast %cst_11 : f32 to vector<128x128xf32>
    %23 = arith.maximumf %21, %22 : vector<128x128xf32>
    %24 = arith.truncf %23 : vector<128x128xf32> to vector<128x128xbf16>
    %c0_12 = arith.constant 0 : index
    %c0_13 = arith.constant 0 : index
    %25 = vector.load %arg6[%c0_12, %c0_13] : memref<32x128xbf16, #tpu.memory_space<vmem>>, vector<32x128xbf16>
    %cst_14 = arith.constant dense<0.000000e+00> : vector<32x128xf32>
    %26 = tpu.matmul %25, %24, %cst_14 {dimension_numbers = #tpu.dot_dimension_numbers<[1], [0], [0], [1], [0, 0, 1, 1], [], []>} : vector<32x128xbf16>, vector<128x128xbf16>, vector<32x128xf32> -> vector<32x128xf32>
    %c0_15 = arith.constant 0 : index
    %c0_16 = arith.constant 0 : index
    %27 = vector.load %arg7[%c0_15, %c0_16] : memref<32x1xf32, #tpu.memory_space<vmem>>, vector<32x1xf32>
    %28 = vector.broadcast %27 : vector<32x1xf32> to vector<32x128xf32>
    %29 = arith.addf %26, %28 : vector<32x128xf32>
    %c0_17 = arith.constant 0 : index
    %c0_18 = arith.constant 0 : index
    %30 = vector.load %arg8[%c0_17, %c0_18] : memref<32x128xf32, #tpu.memory_space<vmem>>, vector<32x128xf32>
    tpu.vector_store %arg8[%c0_17, %c0_18], %29 {strides = array<i32>} : memref<32x128xf32, #tpu.memory_space<vmem>>, vector<32x128xf32>,
    return
  }
  func.func @transform_0(%arg0: i32) -> (i32, i32, i32) {
    %c0_i32 = arith.constant 0 : i32
    %c0_i32_0 = arith.constant 0 : i32
    %c0_i32_1 = arith.constant 0 : i32
    return %arg0, %c0_i32, %c0_i32_0 : i32, i32, i32
  }
  func.func @transform_1(%arg0: i32) -> (i32, i32) {
    %c0_i32 = arith.constant 0 : i32
    %c0_i32_0 = arith.constant 0 : i32
    %c0_i32_1 = arith.constant 0 : i32
    return %c0_i32, %c0_i32_0 : i32, i32
  }
  func.func @transform_2(%arg0: i32) -> (i32, i32) {
    %c0_i32 = arith.constant 0 : i32
    %c0_i32_0 = arith.constant 0 : i32
    %c0_i32_1 = arith.constant 0 : i32
    return %c0_i32, %c0_i32_0 : i32, i32
  }
  func.func @transform_3(%arg0: i32) -> (i32, i32) {
    %c0_i32 = arith.constant 0 : i32
    %c0_i32_0 = arith.constant 0 : i32
    %c0_i32_1 = arith.constant 0 : i32
    return %c0_i32, %c0_i32_0 : i32, i32
  }
  func.func @transform_4(%arg0: i32) -> (i32, i32) {
    %c0_i32 = arith.constant 0 : i32
    %c0_i32_0 = arith.constant 0 : i32
    %c0_i32_1 = arith.constant 0 : i32
    return %c0_i32, %c0_i32_0 : i32, i32
  }
  func.func @transform_5(%arg0: i32) -> (i32, i32) {
    %c0_i32 = arith.constant 0 : i32
    %c0_i32_0 = arith.constant 0 : i32
    %c0_i32_1 = arith.constant 0 : i32
    return %c0_i32, %c0_i32_0 : i32, i32
  }
  func.func @transform_6(%arg0: i32) -> (i32, i32) {
    %c0_i32 = arith.constant 0 : i32
    %c0_i32_0 = arith.constant 0 : i32
    %c0_i32_1 = arith.constant 0 : i32
    return %c0_i32, %c0_i32_0 : i32, i32
  }
  func.func @transform_7(%arg0: i32) -> (i32, i32) {
    %c0_i32 = arith.constant 0 : i32
    %c0_i32_0 = arith.constant 0 : i32
    return %c0_i32, %arg0 : i32, i32
  }
}

</mosaic_0001>

<bundles_post_ra>
// kernel: tpu_custom_call.1
= control target key start
LH: loop header
LB: loop body
LE: loop exit
PB: predicated region body
PF: predicated region fallthrough
CT: control target
= control target key end

     0   :  { %12 = vsyncpa [#allocation3], 0  ;;  %s2158_s0 = inlined_call_operand.vmem [shape: bf16[2,256,8], index: 0, kind: input, shape index: {}]   ;;  %s2159_s1 = inlined_call_operand.vmem [shape: bf16[8,128], index: 1, kind: input, shape index: {}]   ;;  %s2160_s2 = inlined_call_operand.vmem [shape: f32[256,128], index: 2, kind: input, shape index: {}]   ;;  %s2161_s3 = inlined_call_operand.vmem [shape: bf16[128,256], index: 3, kind: input, shape index: {}]   ;;  %s2162_s4 = inlined_call_operand.vmem [shape: f32[128,1], index: 4, kind: input, shape index: {}]   ;;  %s2163_s5 = inlined_call_operand.vmem [shape: bf16[32,128], index: 5, kind: input, shape index: {}]   ;;  %s2164_s6 = inlined_call_operand.vmem [shape: f32[32,1], index: 6, kind: input, shape index: {}]   ;;  %s2165_s7 = inlined_call_operand.hbm [shape: f32[32,256], index: 7, kind: output, shape index: {}]  }
   0x1   :  { %14 = vsyncpa [#allocation3 + $0x1], 0  ;;  %s1632_s24 = smov 0   ;;  %s1634_s25 = smov 0  }
   0x2   :  { %s1636_s26 = smov 0   ;;  %s1638_s27 = smov 0  }
   0x3 LB: > { %s1653_s28 = sadd.s32 4294967295, %s1585_s27   ;;  %s1230_s29 = sadd.s32 4294967294, %s1585_s27   ;;  %s1585_s27 = sphi %s1638_s27, %s2172_s27   ;;  %s1581_s26 = sphi %s1636_s26, %s2171_s26   ;;  %s1577_s25 = sphi %s1634_s25, %s2170_s25   ;;  %s1573_s24 = sphi %s1632_s24, %s2169_s24  }
   0x4   : > { %s1657_s30 = sadd.s32 1, %s1585_s27   ;;  %s179_s8 = sadd.s32 1, %s1581_s26 }
   0x5   : > { %s176_s9 = ssub.s32 %s1585_s27, %s1657_s30  ;;  %p189_p0 = scmp.ne.s32.totalorder %s1581_s26, %s1577_s25 }
   0x6   : > { %p177_p1 = scmp.eq.s32.totalorder %s176_s9, 0  ;;  %p190_p2 = scmp.eq.s32.totalorder %s1653_s28, 1 }
   0x7   : > { %p195_p3 = scmp.ne.s32.totalorder %s1577_s25, %s1573_s24  ;;  %p196_p4 = scmp.eq.s32.totalorder %s1230_s29, 1 }
   0x8   : > { %s1668_s10 = scalar_select %p177_p1, %s1581_s26, %s179_s8  }
   0x9   : > { %p1670_p5 = por %p190_p2, %p189_p0  ;;  %p1674_p6 = por %p196_p4, %p195_p3 }
   0xa   : > { %p1233_p7 = scmp.ge.s32.totalorder %s1585_s27, 1  ;;  %p240_p8 = scmp.lt.s32.totalorder %s1585_s27, 3 }
   0xc   : > { %p241_p9 = pnand %p1233_p7, %p240_p8 }
   0xd   : > { %p272_p10 = scmp.lt.s32.totalorder (!%p241_p9), %s1653_s28, 1  ;;  %s269_s20 = sand.u32 (!%p241_p9), 1, %s1577_s25  }
   0xe   : > { %244 = sbr.rel (%p241_p9) target bundleno = 827 (0x33b), region = 48  ;;  %s1234_s21 = sshll.u32 (!%p241_p9), %s269_s20, 5 }
   0xf   : > { %s271_s22 = scalar_lea.vmem (!%p241_p9), [#allocation2], %s1234_s21  ;;  %s1288_s29 = sshll.u32 (!%p241_p9), %s1653_s28, 7 }
  0x10   : > { %s1168_s23 = sshll.u32 (!%p241_p9), %s271_s22, 4  ;;  %s2116_s13 = scalar_lea.hbm (!%p241_p9), %s2165_s7, %s1288_s29  ;;  %s2111_s23 = int_to_ptr.vmem [resolvable:$true] %s1168_s23 }
  0x11   : > { %s2118_s14 = scalar_lea.sflag (!%p241_p9), [#allocation3], %s269_s20 }
  0x13   : > { %v310_v0 = vld [vmem:[%s2159_s1] sm:$0xf]  ;;  %vm440_vm0 = vcmask 1043456   ;;  %s273_s15 = scalar_select %p272_p10, %s1653_s28, 1  ;;  %vm391_vm1 = vcmask 64512   ;;  %v779_v25 = vld [vmem:[%s2162_s4 + $0x70] sm:$0xff] }
  0x14   : > { %1437 = vmatprep.subr.msk.bf16.mxu0 %vm440_vm0, %v310_v0  ;;  %v442_v1 = vsel %vm440_vm0, %v310_v0, 0  ;;  %v1501_v18 = vld [vmem:[%s2161_s3 + $0x4] ss:$8 sps:$4 sm:$0xff]   ;;  %v1587_v27 = vmov 0   ;;  %v780_v31 = vld [vmem:[%s2162_s4 + $0x78] sm:$0xff]  ;;  %v775_v35 = vld [vmem:[%s2162_s4 + $0x50] sm:$0xff] }
  0x15   : > { %1384 = vmatpush3.bf16.msra.mxu0 %v442_v1  ;;  %s1291_s16 = sshll.u32 %s273_s15, 7  ;;  %973 = vmatprep.mubr.bf16.mxu1 %v1501_v18  ;;  %v777_v32 = vld [vmem:[%s2162_s4 + $0x60] sm:$0xff]  ;;  %v778_v34 = vld [vmem:[%s2162_s4 + $0x68] sm:$0xff]  ;;  %v776_v39 = vld [vmem:[%s2162_s4 + $0x58] sm:$0xff]  ;;  %s1525_s28 = scalar_lea.vmem %s2111_s23, 512 }
  0x16   : > { %s1688_s19 = scalar_lea.vmem %s2158_s0, %s1291_s16  ;;  %1481 = vset.pattern.permute.xlu0 %v1587_v27  ;;  %1482 = vset.pattern.permute.xlu1 %v1587_v27  ;;  %v773_v40 = vld [vmem:[%s2162_s4 + $0x40] sm:$0xff]  ;;  %v774_v42 = vld [vmem:[%s2162_s4 + $0x48] sm:$0xff]  ;;  %v771_v43 = vld [vmem:[%s2162_s4 + $0x30] sm:$0xff]  ;;  %p1526_p11 = scmp.ne.s32.totalorder %s2111_s23, %s1525_s28 }
  0x17   : > { %v1483_v2 = vld [vmem:[%s1688_s19] sm:$0xff]   ;;  %v1484_v3 = vld [vmem:[%s1688_s19 + $0x8] sm:$0xff]   ;;  %v1485_v4 = vld [vmem:[%s1688_s19 + $0x10] sm:$0xff]   ;;  %853 = vperm.xlu0 %1481, %v779_v25   ;;  %843 = vperm.xlu1 %1482, %v777_v32   ;;  %s1588_s15 = smov [#allocation2]  }
  0x18   : > { %1385 = vmatprep.mubr.msk.bf16.mxu0 %vm391_vm1, %v1483_v2  ;;  %v1486_v5 = vld [vmem:[%s1688_s19 + $0x18] sm:$0xff]   ;;  %v1487_v6 = vld [vmem:[%s1688_s19 + $0x20] sm:$0xff]   ;;  %v1488_v7 = vld [vmem:[%s1688_s19 + $0x28] sm:$0xff]   ;;  %p1527_p12 = pnand %p1526_p11, %p1670_p5  ;;  %s1529_s16 = sshll.u32 %s1588_s15, 4  ;;  %s1530_s16 = int_to_ptr.vmem [resolvable:$false] %s1529_s16 }
  0x19   : > { %1386 = vmatmul.mubr.msk.bf16.vlgmr.msra.gmra.mxu0 %vm391_vm1, %v1484_v3  ;;  %v1489_v8 = vld [vmem:[%s1688_s19 + $0x30] sm:$0xff]   ;;  %v1490_v9 = vld [vmem:[%s1688_s19 + $0x38] sm:$0xff]   ;;  %v1491_v10 = vld [vmem:[%s1688_s19 + $0x40] sm:$0xff]   ;;  %s1531_s17 = scalar_lea.vmem %s1530_s16, 1024  ;;  %p1532_p0 = scmp.lt.s32.totalorder %s2111_s23, %s1530_s16 }
  0x1a   : > { %1389 = vmatprep.mubr.msk.bf16.mxu0 %vm391_vm1, %v1485_v4  ;;  %v1492_v11 = vld [vmem:[%s1688_s19 + $0x48] sm:$0xff]   ;;  %v1493_v12 = vld [vmem:[%s1688_s19 + $0x50] sm:$0xff]   ;;  %v1494_v13 = vld [vmem:[%s1688_s19 + $0x58] sm:$0xff]   ;;  %p1528_p13 = pneg %p1527_p12  ;;  %p1533_p1 = scmp.lt.s32.totalorder %s1531_s17, %s1525_s28 }
  0x1b   : > { %v1495_v14 = vld [vmem:[%s1688_s19 + $0x60] sm:$0xff]   ;;  %v1496_v15 = vld [vmem:[%s1688_s19 + $0x68] sm:$0xff]   ;;  %v1497_v16 = vld [vmem:[%s1688_s19 + $0x70] sm:$0xff]   ;;  %858 = vperm.xlu0 %1481, %v780_v31   ;;  %848 = vperm.xlu1 %1482, %v778_v34  }
  0x1c   : > { %v1498_v17 = vld [vmem:[%s1688_s19 + $0x78] sm:$0xff]   ;;  %v607_v45 = vld [vmem:[%s2160_s2 + $0x10] sm:$0xff]  ;;  %v605_v48 = vld [vmem:[%s2160_s2] sm:$0xff]  ;;  %p1534_p2 = por %p1533_p1, %p1532_p0 }
  0x1d   : > { %v623_v46 = vld [vmem:[%s2160_s2 + $0x90] sm:$0xff]  ;;  %v772_v49 = vld [vmem:[%s2162_s4 + $0x38] sm:$0xff]  ;;  %v769_v50 = vld [vmem:[%s2162_s4 + $0x20] sm:$0xff] }
  0x1e   : > { %v608_v51 = vld [vmem:[%s2160_s2 + $0x18] sm:$0xff]  ;;  %v606_v56 = vld [vmem:[%s2160_s2 + $0x8] sm:$0xff]  ;;  %v621_v62 = vld [vmem:[%s2160_s2 + $0x80] sm:$0xff]  ;;  %p1535_p3 = pnand %p1534_p2, %p1528_p13 }
  0x1f   : > { %833 = vperm.xlu0 %1481, %v775_v35   ;;  %838 = vperm.xlu1 %1482, %v776_v39   ;;  %v624_v52 = vld [vmem:[%s2160_s2 + $0x98] sm:$0xff]  ;;  %v622_v57 = vld [vmem:[%s2160_s2 + $0x88] sm:$0xff]  ;;  %v767_v4 = vld [vmem:[%s2162_s4 + $0x10] sm:$0xff] }
  0x20   : > { %v770_v3 = vld [vmem:[%s2162_s4 + $0x28] sm:$0xff]  ;;  %v1844_v35 = vld [vmem:[%s2160_s2 + $0x30] sm:$0xff] }
  0x21   : > { %1390 = vmatmul.mubr.msk.bf16.gmra.mxu0 %vm391_vm1, %v1486_v5  ;;  %v1849_v39 = vld [vmem:[%s2160_s2 + $0xb0] sm:$0xff] }
  0x22   : > { %1393 = vmatprep.mubr.msk.bf16.mxu0 %vm391_vm1, %v1487_v6 }
  0x23   : > { %823 = vperm.xlu0 %1481, %v773_v40   ;;  %828 = vperm.xlu1 %1482, %v774_v42   ;;  %v610_v40 = vld [vmem:[%s2160_s2 + $0x28] sm:$0xff]  ;;  %v609_v42 = vld [vmem:[%s2160_s2 + $0x20] sm:$0xff] }
  0x27   : > { %813 = vperm.xlu0 %1481, %v771_v43   ;;  %818 = vperm.xlu1 %1482, %v772_v49   ;;  %v1860_v43 = vld [vmem:[%s2160_s2 + $0xb8] sm:$0xff] }
  0x29   : > { %1394 = vmatmul.mubr.msk.bf16.gmra.mxu0 %vm391_vm1, %v1488_v7 }
  0x2a   : > { %1397 = vmatprep.mubr.msk.bf16.mxu0 %vm391_vm1, %v1489_v8 }
  0x2b   : > { %803 = vperm.xlu0 %1481, %v769_v50   ;;  %808 = vperm.xlu1 %1482, %v770_v3   ;;  %v625_v50 = vld [vmem:[%s2160_s2 + $0xa0] sm:$0xff] }
  0x2f   : > { %793 = vperm.xlu0 %1481, %v767_v4  }
  0x31   : > { %1398 = vmatmul.mubr.msk.bf16.gmra.mxu0 %vm391_vm1, %v1490_v9 }
  0x32   : > { %1401 = vmatprep.mubr.msk.bf16.mxu0 %vm391_vm1, %v1491_v10 }
  0x39   : > { %1402 = vmatmul.mubr.msk.bf16.gmra.mxu0 %vm391_vm1, %v1492_v11 }
  0x3a   : > { %1405 = vmatprep.mubr.msk.bf16.mxu0 %vm391_vm1, %v1493_v12 }
  0x41   : > { %1406 = vmatmul.mubr.msk.bf16.gmra.mxu0 %vm391_vm1, %v1494_v13 }
  0x42   : > { %1409 = vmatprep.mubr.msk.bf16.mxu0 %vm391_vm1, %v1495_v14 }
  0x49   : > { %1410 = vmatmul.mubr.msk.bf16.gmra.mxu0 %vm391_vm1, %v1496_v15 }
  0x4a   : > { %1413 = vmatprep.mubr.msk.bf16.mxu0 %vm391_vm1, %v1497_v16 }
  0x51   : > { %1414 = vmatmul.mubr.msk.bf16.gmra.mxu0 %vm391_vm1, %v1498_v17 }
  0xd9   : > { %v1387_v19 = vpop.f32.mrf.mxu0 }
  0xda   : > { %v639_v54 = vmul.f32 %v1387_v19, %v607_v45  ;;  %v703_v55 = vmul.f32 %v1387_v19, %v623_v46 }
  0xdb   : > { %v1725_v20 = vpop.f32.mrf.mxu0 }
  0xdc   : > { %v637_v58 = vmul.f32 %v605_v48, %v1725_v20  ;;  %v701_v14 = vmul.f32 %v621_v62, %v1725_v20  ;;  %v1833_v20 = vld [vmem:[%s2160_s2 + $0x38] sm:$0xff] }
  0xdd   : > { %v1388_v21 = vpop.f32.mrf.mxu0 }
  0xde   : > { %v640_v63 = vmul.f32 %v1388_v21, %v608_v51  ;;  %v704_v0 = vmul.f32 %v1388_v21, %v624_v52  ;;  %v768_v21 = vld [vmem:[%s2162_s4 + $0x18] sm:$0xff] }
  0xdf   : > { %v481_v22 = vpop.f32.mrf.mxu0  ;;  %798 = vperm.xlu1 %1482, %v768_v21  }
  0xe0   : > { %v638_v5 = vmul.f32 %v606_v56, %v481_v22  ;;  %v702_v6 = vmul.f32 %v622_v57, %v481_v22  ;;  %v765_v22 = vld [vmem:[%s2162_s4] sm:$0xff] }
  0xe1   : > { %v1727_v23 = vpop.f32.mrf.mxu0  ;;  %783 = vperm.xlu0 %1481, %v765_v22   ;;  %v635_v22 = vld [vmem:[%s2160_s2 + $0xf0] sm:$0xff] }
  0xe3   : > { %v1729_v24 = vpop.f32.mrf.mxu0 }
  0xe5   : > { %v1734_v26 = vpop.f32.mrf.mxu0 }
  0xe7   : > { %v1736_v28 = vpop.f32.mrf.mxu0 }
  0xe9   : > { %v1738_v29 = vpop.f32.mrf.mxu0 }
  0xeb   : > { %v1740_v30 = vpop.f32.mrf.mxu0 }
  0xed   : > { %v1748_v33 = vpop.f32.mrf.mxu0 }
  0xef   : > { %v1756_v36 = vpop.f32.mrf.mxu0 }
  0xf1   : > { %v1758_v37 = vpop.f32.mrf.mxu0 }
  0xf3   : > { %v1760_v38 = vpop.f32.mrf.mxu0 }
  0xf5   : > { %v1768_v41 = vpop.f32.mrf.mxu0 }
  0xf7   : > { %v1776_v44 = vpop.f32.mrf.mxu0 }
  0xf9   : > { %v1403_v47 = vpop.f32.mrf.mxu0 }
  0xfa   : > { %v655_v59 = vmul.f32 %v1403_v47, %v623_v46  ;;  %v687_v60 = vmul.f32 %v1403_v47, %v607_v45  ;;  %v626_v45 = vld [vmem:[%s2160_s2 + $0xa8] sm:$0xff] }
  0xfb   : > { %v542_v53 = vpop.f32.mrf.mxu0 }
  0xfc   : > { %v653_v7 = vmul.f32 %v621_v62, %v542_v53  ;;  %v685_v8 = vmul.f32 %v605_v48, %v542_v53  ;;  %v1818_v15 = vadd.f32 %v655_v59, %v639_v54  ;;  %v719_v16 = vsub.f32 %v687_v60, %v703_v55  ;;  %v766_v53 = vld [vmem:[%s2162_s4 + $0x8] sm:$0xff]  ;;  %v1066_v54 = vld [vmem:[%s2164_s6] sm:$0xff] }
  0xfd   : > { %v1404_v61 = vpop.f32.mrf.mxu0  ;;  %v643_v55 = vmul.f32 %v1727_v23, %v1844_v35  ;;  %v706_v60 = vmul.f32 %v626_v45, %v1736_v28  ;;  %788 = vperm.xlu1 %1482, %v766_v53   ;;  %1072 = vperm.xlu0 %1481, %v1066_v54   ;;  %v617_v53 = vld [vmem:[%s2160_s2 + $0x60] sm:$0xff] }
  0xfe   : > { %v656_v1 = vmul.f32 %v1404_v61, %v624_v52  ;;  %v688_v2 = vmul.f32 %v1404_v61, %v608_v51  ;;  %v1835_v25 = vadd.f32 %v653_v7, %v637_v58  ;;  %v717_v27 = vsub.f32 %v685_v8, %v701_v14  ;;  %v1069_v14 = vld [vmem:[%s2164_s6 + $0x18] sm:$0xff] }
  0xff   : > { %v545_v9 = vpop.f32.mrf.mxu0  ;;  %v644_v51 = vmul.f32 %v1734_v26, %v1833_v20 }
 0x100   : > { %v1815_v10 = vadd.f32 %v656_v1, %v640_v63  ;;  %v720_v11 = vsub.f32 %v688_v2, %v704_v0  ;;  %v654_v12 = vmul.f32 %v622_v57, %v545_v9  ;;  %v686_v13 = vmul.f32 %v606_v56, %v545_v9 }
 0x101   : > { %v1820_v17 = vpop.f32.mrf.mxu0  ;;  %v642_v56 = vmul.f32 %v610_v40, %v1736_v28  ;;  %v641_v0 = vmul.f32 %v609_v42, %v1729_v24  ;;  %v705_v1 = vmul.f32 %v625_v50, %v1729_v24  ;;  %v1068_v28 = vld [vmem:[%s2164_s6 + $0x10] sm:$0xff] }
 0x102   : > { %v1822_v18 = vadd.f32 %v654_v12, %v638_v5  ;;  %v718_v19 = vsub.f32 %v686_v13, %v702_v6  ;;  %v1837_v32 = vpack.c.bf16 %v720_v11, %v719_v16  ;;  %v734_v34 = vpack.c.bf16 %v1815_v10, %v1818_v15  ;;  %v1067_v6 = vld [vmem:[%s2164_s6 + $0x8] sm:$0xff]  ;;  %1082 = vperm.xlu0 %1481, %v1068_v28   ;;  %v1504_v10 = vld [vmem:[%s2161_s3 + $0x10] ss:$8 sps:$4 sm:$0xff]  }
 0x103   : > { %v558_v31 = vpop.f32.mrf.mxu0  ;;  %v659_v46 = vmul.f32 %v1820_v17, %v1849_v39  ;;  %1077 = vperm.xlu1 %1482, %v1067_v6   ;;  %v1505_v15 = vld [vmem:[%s2161_s3 + $0x24] ss:$8 sps:$4 sm:$0xff]  }
 0x104   : > { %v1869_v48 = vpack.c.bf16 %v718_v19, %v717_v27  ;;  %v657_v57 = vmul.f32 %v625_v50, %v558_v31  ;;  %v689_v58 = vmul.f32 %v609_v42, %v558_v31  ;;  %v619_v19 = vld [vmem:[%s2160_s2 + $0x70] sm:$0xff]  ;;  %v633_v27 = vld [vmem:[%s2160_s2 + $0xe0] sm:$0xff]  ;;  %v620_v31 = vld [vmem:[%s2160_s2 + $0x78] sm:$0xff] }
 0x105   : > { %v1867_v47 = vpop.f32.mrf.mxu0  ;;  %v1894_v2 = vadd.f32 %v659_v46, %v643_v55  ;;  %v634_v50 = vld [vmem:[%s2160_s2 + $0xe8] sm:$0xff]  ;;  %v713_v54 = vmul.f32 %v633_v27, %v1760_v38  ;;  %v652_v55 = vmul.f32 %v1768_v41, %v620_v31 }
 0x106   : > { %v660_v52 = vmul.f32 %v1867_v47, %v1860_v43  ;;  %v1906_v7 = vadd.f32 %v657_v57, %v641_v0  ;;  %v721_v24 = vsub.f32 %v689_v58, %v705_v1  ;;  %v616_v57 = vld [vmem:[%s2160_s2 + $0x58] sm:$0xff]  ;;  %v714_v0 = vmul.f32 %v634_v50, %v1776_v44 }
 0x107   : > { %v561_v59 = vpop.f32.mrf.mxu0  ;;  %1087 = vperm.xlu1 %1482, %v1069_v14   ;;  %v632_v58 = vld [vmem:[%s2160_s2 + $0xd8] sm:$0xff] }
 0x108   : > { %v1890_v61 = vadd.f32 %v660_v52, %v644_v51  ;;  %v658_v62 = vmul.f32 %v626_v45, %v561_v59  ;;  %v690_v63 = vmul.f32 %v610_v40, %v561_v59  ;;  %v636_v40 = vld [vmem:[%s2160_s2 + $0xf8] sm:$0xff]  ;;  %v651_v51 = vmul.f32 %v1758_v37, %v619_v19 }
 0x109   : > { %v1896_v3 = vpop.f32.mrf.mxu0  ;;  %v715_v52 = vmul.f32 %v1758_v37, %v635_v22  ;;  %v716_v59 = vmul.f32 %v1768_v41, %v636_v40  ;;  %v618_v37 = vld [vmem:[%s2160_s2 + $0x68] sm:$0xff] }
 0x10a   : > { %v1898_v4 = vadd.f32 %v658_v62, %v642_v56  ;;  %v722_v5 = vsub.f32 %v690_v63, %v706_v60  ;;  %v736_v9 = vpack.c.bf16 %v1890_v61, %v1894_v2  ;;  %v1519_v61 = vld [vmem:[%s2161_s3 + $0x60] ss:$8 sps:$4 sm:$0xff]   ;;  %v1520_v2 = vld [vmem:[%s2161_s3 + $0x74] ss:$8 sps:$4 sm:$0xff]  }
 0x10b   : > { %v1908_v8 = vpop.f32.mrf.mxu0 }
 0x10c   : > { %v1912_v12 = vpack.c.bf16 %v722_v5, %v721_v24  ;;  %v735_v13 = vpack.c.bf16 %v1898_v4, %v1906_v7  ;;  %v615_v24 = vld [vmem:[%s2160_s2 + $0x50] sm:$0xff]  ;;  %v2059_v7 = vpop.permute.xlu0 %853 }
 0x10d   : > { %v1412_v11 = vpop.f32.mrf.mxu0  ;;  %v1522_v4 = vld [vmem:[%s2161_s3 + $0x70] ss:$8 sps:$4 sm:$0xff]  }
 0x10e   : > { %v696_v1 = vmul.f32 %v1412_v11, %v616_v57 }
 0x10f   : > { %v1919_v16 = vpop.f32.mrf.mxu0 }
 0x111   : > { %v1415_v21 = vpop.f32.mrf.mxu0 }
 0x112   : > { %v667_v42 = vmul.f32 %v1415_v21, %v635_v22  ;;  %v699_v45 = vmul.f32 %v1415_v21, %v619_v19  ;;  %v631_v22 = vld [vmem:[%s2160_s2 + $0xd0] sm:$0xff] }
 0x113   : > { %v590_v46 = vpop.f32.mrf.mxu0 }
 0x114   : > { %v697_v60 = vmul.f32 %v617_v53, %v590_v46  ;;  %v731_v28 = vsub.f32 %v699_v45, %v715_v52  ;;  %v683_v6 = vadd.f32 %v667_v42, %v651_v51  ;;  %v665_v45 = vmul.f32 %v633_v27, %v590_v46 }
 0x115   : > { %v1416_v56 = vpop.f32.mrf.mxu0 }
 0x116   : > { %v668_v62 = vmul.f32 %v1416_v56, %v636_v40  ;;  %v700_v63 = vmul.f32 %v1416_v56, %v620_v31  ;;  %v712_v31 = vmul.f32 %v1748_v33, %v632_v58  ;;  %v650_v40 = vmul.f32 %v618_v37, %v1776_v44 }
 0x117   : > { %v593_v5 = vpop.f32.mrf.mxu0  ;;  %v695_v56 = vmul.f32 %v1896_v3, %v615_v24  ;;  %v729_v42 = vsub.f32 %v697_v60, %v713_v54  ;;  %v711_v44 = vmul.f32 %v1738_v29, %v631_v22  ;;  %v613_v54 = vld [vmem:[%s2160_s2 + $0x40] sm:$0xff] }
 0x118   : > { %v666_v14 = vmul.f32 %v634_v50, %v593_v5  ;;  %v698_v19 = vmul.f32 %v618_v37, %v593_v5  ;;  %v732_v41 = vsub.f32 %v700_v63, %v716_v59  ;;  %v684_v21 = vadd.f32 %v668_v62, %v652_v55  ;;  %v614_v50 = vld [vmem:[%s2160_s2 + $0x48] sm:$0xff]  ;;  %v629_v60 = vld [vmem:[%s2160_s2 + $0xc0] sm:$0xff] }
 0x119   : > { %v630_v55 = vld [vmem:[%s2160_s2 + $0xc8] sm:$0xff]  ;;  %v649_v59 = vmul.f32 %v617_v53, %v1760_v38  ;;  %v664_v62 = vmul.f32 %v1412_v11, %v632_v58  ;;  %v728_v37 = vsub.f32 %v696_v1, %v712_v31  ;;  %v694_v27 = vmul.f32 %v614_v50, %v1919_v16 }
 0x11a   : > { %v730_v51 = vsub.f32 %v698_v19, %v714_v0  ;;  %v748_v52 = vpack.c.bf16 %v732_v41, %v731_v28  ;;  %v740_v49 = vpack.c.bf16 %v684_v21, %v683_v6  ;;  %v682_v63 = vadd.f32 %v666_v14, %v650_v40 }
 0x11b   : > { %v648_v0 = vmul.f32 %v1748_v33, %v616_v57  ;;  %v663_v38 = vmul.f32 %v1896_v3, %v631_v22  ;;  %v681_v11 = vadd.f32 %v665_v45, %v649_v59  ;;  %v710_v53 = vmul.f32 %v630_v55, %v1756_v36 }
 0x11c   : > { %1309 = vmatprep.subr.bf16.mxu1 %v748_v52  ;;  %v747_v46 = vpack.c.bf16 %v730_v51, %v729_v42  ;;  %v727_v58 = vsub.f32 %v695_v56, %v711_v44  ;;  %v693_v1 = vmul.f32 %v613_v54, %v1908_v8  ;;  %v647_v5 = vmul.f32 %v1738_v29, %v615_v24  ;;  %v1523_v42 = vld [vmem:[%s2163_s5] sm:$0xff]  }
 0x11d   : > { %1310 = vmatpush3.bf16.msra.mxu1 %v740_v49  ;;  %v680_v28 = vadd.f32 %v664_v62, %v648_v0  ;;  %v662_v6 = vmul.f32 %v630_v55, %v1919_v16  ;;  %v739_v14 = vpack.c.bf16 %v682_v63, %v681_v11  ;;  %v709_v19 = vmul.f32 %v629_v60, %v1740_v30 }
 0x11e   : > { %1311 = vmatprep.subr.bf16.mxu1 %v747_v46  ;;  %v692_v33 = vmul.f32 %v1867_v47, %v1833_v20  ;;  %v726_v3 = vsub.f32 %v694_v27, %v710_v53  ;;  %v746_v57 = vpack.c.bf16 %v728_v37, %v727_v58  ;;  %v646_v49 = vmul.f32 %v614_v50, %v1756_v36 }
 0x11f   : > { %v679_v41 = vadd.f32 %v663_v38, %v647_v5  ;;  %v661_v21 = vmul.f32 %v629_v60, %v1908_v8  ;;  %v708_v29 = vmul.f32 %v1734_v26, %v1860_v43  ;;  %v691_v16 = vmul.f32 %v1820_v17, %v1844_v35  ;;  %v1502_v17 = vld [vmem:[%s2161_s3 + $0x14] ss:$8 sps:$4 sm:$0xff]   ;;  %v1513_v35 = vld [vmem:[%s2161_s3 + $0x40] ss:$8 sps:$4 sm:$0xff]   ;;  %v1516_v43 = vld [vmem:[%s2161_s3 + $0x50] ss:$8 sps:$4 sm:$0xff]   ;;  %1433 = vmatprep.mubr.bf16.mxu0 %v1523_v42 }
 0x120   : > { %v725_v24 = vsub.f32 %v693_v1, %v709_v19  ;;  %v645_v22 = vmul.f32 %v613_v54, %v1740_v30  ;;  %v678_v31 = vadd.f32 %v662_v6, %v646_v49  ;;  %v707_v47 = vmul.f32 %v1727_v23, %v1849_v39  ;;  %v1499_v23 = vld [vmem:[%s2161_s3] ss:$8 sps:$4 sm:$0xff]   ;;  %v1514_v39 = vld [vmem:[%s2161_s3 + $0x54] ss:$8 sps:$4 sm:$0xff]  }
 0x121   : > { %1312 = vmatpush3.bf16.msra.mxu1 %v739_v14  ;;  %v738_v20 = vpack.c.bf16 %v680_v28, %v679_v41  ;;  %v724_v36 = vsub.f32 %v692_v33, %v708_v29  ;;  %v2168_v30 = vpack.c.bf16 %v1822_v18, %v1835_v25  ;;  %v1507_v18 = vld [vmem:[%s2161_s3 + $0x20] ss:$8 sps:$4 sm:$0xff]   ;;  %v1508_v25 = vld [vmem:[%s2161_s3 + $0x34] ss:$8 sps:$4 sm:$0xff]  }
 0x122   : > { %1313 = vmatprep.subr.bf16.mxu1 %v746_v57  ;;  %v745_v40 = vpack.c.bf16 %v726_v3, %v725_v24  ;;  %v677_v56 = vadd.f32 %v661_v21, %v645_v22  ;;  %v723_v8 = vsub.f32 %v691_v16, %v707_v47 }
 0x124   : > { %v737_v45 = vpack.c.bf16 %v678_v31, %v677_v56  ;;  %v744_v26 = vpack.c.bf16 %v724_v36, %v723_v8 }
 0x125   : > { %1314 = vmatpush3.bf16.msra.mxu1 %v738_v20 }
 0x126   : > { %1315 = vmatprep.subr.bf16.mxu1 %v745_v40 }
 0x129   : > { %1316 = vmatpush3.bf16.msra.mxu1 %v737_v45 }
 0x12a   : > { %1317 = vmatprep.subr.bf16.mxu1 %v744_v26 }
 0x12d   : > { %1318 = vmatpush3.bf16.msra.mxu1 %v736_v9  ;;  %v2061_v9 = vpop.permute.xlu1 %843 }
 0x12e   : > { %1319 = vmatprep.subr.bf16.mxu1 %v1912_v12  ;;  %v2063_v12 = vpop.permute.xlu0 %858 }
 0x131   : > { %1320 = vmatpush3.bf16.msra.mxu1 %v735_v13  ;;  %v2065_v13 = vpop.permute.xlu1 %848 }
 0x132   : > { %1321 = vmatprep.subr.bf16.mxu1 %v1837_v32  ;;  %v1510_v32 = vld [vmem:[%s2161_s3 + $0x30] ss:$8 sps:$4 sm:$0xff]   ;;  %v2070_v51 = vpop.permute.xlu0 %833 }
 0x135   : > { %1322 = vmatpush3.bf16.msra.mxu1 %v734_v34  ;;  %v1511_v34 = vld [vmem:[%s2161_s3 + $0x44] ss:$8 sps:$4 sm:$0xff]   ;;  %v2072_v52 = vpop.permute.xlu1 %838 }
 0x136   : > { %1323 = vmatprep.subr.bf16.mxu1 %v1869_v48  ;;  %v1517_v48 = vld [vmem:[%s2161_s3 + $0x64] ss:$8 sps:$4 sm:$0xff]   ;;  %v2074_v50 = vpop.permute.xlu0 %823 }
 0x139   : > { %1324 = vmatpush3.bf16.msra.mxu1 %v2168_v30  ;;  %v2076_v55 = vpop.permute.xlu1 %828 }
 0x13a   : > { %v2078_v59 = vpop.permute.xlu0 %813 }
 0x13c   : > { %974 = vmatmul.mubr.bf16.vlgmr.msra.gmra.mxu1 %v1499_v23 }
 0x13d   : > { %981 = vmatprep.mubr.bf16.mxu1 %v1502_v17  ;;  %v2080_v62 = vpop.permute.xlu1 %818 }
 0x13e   : > { %v2082_v63 = vpop.permute.xlu0 %803 }
 0x141   : > { %v2084_v44 = vpop.permute.xlu1 %808 }
 0x142   : > { %v794_v37 = vpop.permute.xlu0 %793 }
 0x144   : > { %982 = vmatmul.mubr.bf16.gmra.mxu1 %v1504_v10 }
 0x145   : > { %989 = vmatprep.mubr.bf16.mxu1 %v1505_v15 }
 0x14c   : > { %990 = vmatmul.mubr.bf16.gmra.mxu1 %v1507_v18 }
 0x14d   : > { %997 = vmatprep.mubr.bf16.mxu1 %v1508_v25 }
 0x154   : > { %998 = vmatmul.mubr.bf16.gmra.mxu1 %v1510_v32 }
 0x155   : > { %1005 = vmatprep.mubr.bf16.mxu1 %v1511_v34 }
 0x15a   : > { %v799_v46 = vpop.permute.xlu1 %798 }
 0x15c   : > { %1006 = vmatmul.mubr.bf16.gmra.mxu1 %v1513_v35  ;;  %v784_v0 = vpop.permute.xlu0 %783 }
 0x15d   : > { %1013 = vmatprep.mubr.bf16.mxu1 %v1514_v39 }
 0x164   : > { %1014 = vmatmul.mubr.bf16.gmra.mxu1 %v1516_v43 }
 0x165   : > { %1021 = vmatprep.mubr.bf16.mxu1 %v1517_v48 }
 0x16c   : > { %1022 = vmatmul.mubr.bf16.gmra.mxu1 %v1519_v61 }
 0x16d   : > { %1029 = vmatprep.mubr.bf16.mxu1 %v1520_v2 }
 0x174   : > { %1030 = vmatmul.mubr.bf16.gmra.mxu1 %v1522_v4 }
 0x178   : > { %v789_v53 = vpop.permute.xlu1 %788 }
 0x1fc   : > { %v1325_v27 = vpop.f32.mrf.mxu1 }
 0x1fe   : > { %v1326_v54 = vpop.f32.mrf.mxu1 }
 0x1ff   : > { %v1327_v60 = vadd.f32 %v1326_v54, %v1325_v27 }
 0x200   : > { %v1328_v38 = vpop.f32.mrf.mxu1 }
 0x201   : > { %v976_v58 = vadd.f32 %v1327_v60, %v784_v0 }
 0x202   : > { %v1329_v11 = vpop.f32.mrf.mxu1 }
 0x203   : > { %v1330_v1 = vadd.f32 %v1329_v11, %v1328_v38  ;;  %v1038_v14 = vmax.f32 %v976_v58, 0.0 }
 0x204   : > { %v1331_v5 = vpop.f32.mrf.mxu1 }
 0x205   : > { %v979_v28 = vadd.f32 %v1330_v1, %v789_v53 }
 0x206   : > { %v1332_v6 = vpop.f32.mrf.mxu1 }
 0x207   : > { %v1039_v19 = vmax.f32 %v979_v28, 0.0  ;;  %v1333_v33 = vadd.f32 %v1332_v6, %v1331_v5 }
 0x208   : > { %v1334_v3 = vpop.f32.mrf.mxu1 }
 0x209   : > { %v2086_v57 = vpack.c.bf16 %v1039_v19, %v1038_v14  ;;  %v984_v41 = vadd.f32 %v1333_v33, %v794_v37 }
 0x20a   : > { %v1335_v49 = vpop.f32.mrf.mxu1 }
 0x20b   : > { %v1336_v21 = vadd.f32 %v1335_v49, %v1334_v3  ;;  %v1040_v22 = vmax.f32 %v984_v41, 0.0 }
 0x20c   : > { %v1337_v29 = vpop.f32.mrf.mxu1 }
 0x20d   : > { %v987_v16 = vadd.f32 %v1336_v21, %v799_v46 }
 0x20e   : > { %v1338_v24 = vpop.f32.mrf.mxu1 }
 0x20f   : > { %v1041_v31 = vmax.f32 %v987_v16, 0.0 }
 0x210   : > { %v1340_v20 = vpop.f32.mrf.mxu1 }
 0x211   : > { %v2088_v47 = vpack.c.bf16 %v1041_v31, %v1040_v22 }
 0x212   : > { %v1341_v36 = vpop.f32.mrf.mxu1 }
 0x214   : > { %v1343_v40 = vpop.f32.mrf.mxu1 }
 0x216   : > { %v1344_v56 = vpop.f32.mrf.mxu1 }
 0x218   : > { %v1346_v8 = vpop.f32.mrf.mxu1 }
 0x21a   : > { %v1347_v45 = vpop.f32.mrf.mxu1 }
 0x21c   : > { %v1349_v26 = vpop.f32.mrf.mxu1 }
 0x21e   : > { %v1350_v23 = vpop.f32.mrf.mxu1 }
 0x21f   : > { %v1351_v6 = vadd.f32 %v1350_v23, %v1349_v26 }
 0x220   : > { %v1352_v30 = vpop.f32.mrf.mxu1 }
 0x222   : > { %v1353_v17 = vpop.f32.mrf.mxu1 }
 0x223   : > { %v1354_v53 = vadd.f32 %v1353_v17, %v1352_v30 }
 0x224   : > { %v1355_v10 = vpop.f32.mrf.mxu1 }
 0x226   : > { %v1356_v15 = vpop.f32.mrf.mxu1 }
 0x227   : > { %v1357_v0 = vadd.f32 %v1356_v15, %v1355_v10 }
 0x228   : > { %v1358_v18 = vpop.f32.mrf.mxu1 }
 0x229   : > { %v1016_v14 = vadd.f32 %v1357_v0, %v2070_v51  ;;  %v1339_v51 = vadd.f32 %v1338_v24, %v1337_v29 }
 0x22a   : > { %v1359_v25 = vpop.f32.mrf.mxu1 }
 0x22b   : > { %v1360_v27 = vadd.f32 %v1359_v25, %v1358_v18  ;;  %v1048_v41 = vmax.f32 %v1016_v14, 0.0 }
 0x22c   : > { %v1361_v32 = vpop.f32.mrf.mxu1 }
 0x22d   : > { %v1019_v58 = vadd.f32 %v1360_v27, %v2072_v52  ;;  %v1342_v52 = vadd.f32 %v1341_v36, %v1340_v20 }
 0x22e   : > { %v1362_v34 = vpop.f32.mrf.mxu1 }
 0x22f   : > { %v1363_v42 = vadd.f32 %v1362_v34, %v1361_v32  ;;  %v1049_v3 = vmax.f32 %v1019_v58, 0.0 }
 0x230   : > { %v1364_v35 = vpop.f32.mrf.mxu1 }
 0x231   : > { %v1024_v38 = vadd.f32 %v1363_v42, %v2061_v9  ;;  %v1345_v9 = vadd.f32 %v1344_v56, %v1343_v40  ;;  %v1059_v22 = vpack.c.bf16 %v1049_v3, %v1048_v41 }
 0x232   : > { %v1365_v39 = vpop.f32.mrf.mxu1 }
 0x233   : > { %v1366_v61 = vadd.f32 %v1365_v39, %v1364_v35  ;;  %v1050_v19 = vmax.f32 %v1024_v38, 0.0  ;;  %v1000_v31 = vadd.f32 %v1345_v9, %v2078_v59  ;;  %v1524_v59 = vld [vmem:[%s2163_s5 + $0x8] sm:$0xff]  }
 0x234   : > { %v1367_v43 = vpop.f32.mrf.mxu1 }
 0x235   : > { %v1027_v46 = vadd.f32 %v1366_v61, %v2065_v13  ;;  %v1348_v13 = vadd.f32 %v1347_v45, %v1346_v8  ;;  %v1044_v40 = vmax.f32 %v1000_v31, 0.0 }
 0x236   : > { %v1368_v48 = vpop.f32.mrf.mxu1 }
 0x237   : > { %v1369_v2 = vadd.f32 %v1368_v48, %v1367_v43  ;;  %v1051_v1 = vmax.f32 %v1027_v46, 0.0  ;;  %v1003_v21 = vadd.f32 %v1348_v13, %v2080_v62 }
 0x238   : > { %v1370_v4 = vpop.f32.mrf.mxu1 }
 0x239   : > { %v1032_v54 = vadd.f32 %v1369_v2, %v2059_v7  ;;  %v1011_v7 = vadd.f32 %v1354_v53, %v2076_v55  ;;  %v1060_v49 = vpack.c.bf16 %v1051_v1, %v1050_v19  ;;  %v995_v55 = vadd.f32 %v1342_v52, %v2084_v44  ;;  %v1078_v44 = vpop.permute.xlu1 %1077 }
 0x23a   : > { %v1371_v37 = vpop.f32.mrf.mxu1  ;;  %v1045_v45 = vmax.f32 %v1003_v21, 0.0 }
 0x23b   : > { %v1372_v60 = vadd.f32 %v1371_v37, %v1370_v4  ;;  %v1052_v5 = vmax.f32 %v1032_v54, 0.0  ;;  %v1047_v16 = vmax.f32 %v1011_v7, 0.0  ;;  %v1043_v20 = vmax.f32 %v995_v55, 0.0 }
 0x23c   : > { %v1057_v62 = vpack.c.bf16 %v1045_v45, %v1044_v40 }
 0x23d   : > { %v1035_v11 = vadd.f32 %v1372_v60, %v2063_v12  ;;  %v1008_v12 = vadd.f32 %v1351_v6, %v2074_v50  ;;  %v992_v50 = vadd.f32 %v1339_v51, %v2082_v63  ;;  %v1073_v63 = vpop.permute.xlu0 %1072  ;;  %v1088_v17 = vpop.permute.xlu1 %1087 }
 0x23f   : > { %v1053_v28 = vmax.f32 %v1035_v11, 0.0  ;;  %v1046_v8 = vmax.f32 %v1008_v12, 0.0  ;;  %v1042_v36 = vmax.f32 %v992_v50, 0.0 }
 0x241   : > { %v1061_v33 = vpack.c.bf16 %v1053_v28, %v1052_v5  ;;  %v1058_v26 = vpack.c.bf16 %v1047_v16, %v1046_v8  ;;  %v1056_v29 = vpack.c.bf16 %v1043_v20, %v1042_v36  ;;  %v1083_v24 = vpop.permute.xlu0 %1082 }
 0x243   : > { %1417 = vmatprep.subr.bf16.mxu0 %v1061_v33 }
 0x244   : > { %1418 = vmatpush3.bf16.msra.mxu0 %v1061_v33 }
 0x245   : > { %1419 = vmatprep.subr.bf16.mxu0 %v1060_v49 }
 0x248   : > { %1420 = vmatpush3.bf16.msra.mxu0 %v1060_v49 }
 0x249   : > { %1421 = vmatprep.subr.bf16.mxu0 %v1059_v22 }
 0x24c   : > { %1422 = vmatpush3.bf16.msra.mxu0 %v1059_v22 }
 0x24d   : > { %1423 = vmatprep.subr.bf16.mxu0 %v1058_v26 }
 0x250   : > { %1424 = vmatpush3.bf16.msra.mxu0 %v1058_v26 }
 0x251   : > { %1425 = vmatprep.subr.bf16.mxu0 %v1057_v62 }
 0x254   : > { %1426 = vmatpush3.bf16.msra.mxu0 %v1057_v62 }
 0x255   : > { %1427 = vmatprep.subr.bf16.mxu0 %v1056_v29 }
 0x258   : > { %1428 = vmatpush3.bf16.msra.mxu0 %v1056_v29 }
 0x259   : > { %1429 = vmatprep.subr.bf16.mxu0 %v2088_v47 }
 0x25c   : > { %1430 = vmatpush3.bf16.msra.mxu0 %v2088_v47 }
 0x25d   : > { %1431 = vmatprep.subr.bf16.mxu0 %v2086_v57 }
 0x260   : > { %1432 = vmatpush3.bf16.msra.mxu0 %v2086_v57 }
 0x263   : > { %1434 = vmatmul.mubr.bf16.vlgmr.msra.gmra.mxu0 %v1524_v59 }
 0x323   : > { %v1435_v56 = vpop.f32.mrf.mxu0 }
 0x324   : > { %v1145_v23 = vadd.f32 %v1435_v56, %v1083_v24 }
 0x325   : > { %v1136_v47 = vpop.f32.mrf.mxu0 }
 0x326   : > { %1153 = vst [vmem:[%s271_s22 + $0x10] sm:$0xff] %v1145_v23  ;;  %v1137_v30 = vadd.f32 %v1136_v47, %v1073_v63 }
 0x327   : > { %v1436_v10 = vpop.f32.mrf.mxu0 }
 0x328   : > { %1151 = vst [vmem:[%s271_s22] sm:$0xff] %v1137_v30  ;;  %v1148_v57 = vadd.f32 %v1436_v10, %v1088_v17 }
 0x329   : > { %v1139_v15 = vpop.f32.mrf.mxu0 }
 0x32a   : > { %1154 = vst [vmem:[%s271_s22 + $0x18] sm:$0xff] %v1148_v57  ;;  %v1140_v18 = vadd.f32 %v1139_v15, %v1078_v44 }
 0x32c   : > { %1152 = vst [vmem:[%s271_s22 + $0x8] sm:$0xff] %v1140_v18 }
 0x32d   : > { %1538 = shalt.err (!%p1535_p3)
}
 0x32e   : > { %s1539_s18 = scalar_lea.hbm %s2116_s13, 512  ;;  %s1543_s21 = scalar_lea.hbm %s2165_s7, 1024 }
 0x32f   : > { %p1540_p4 = scmp.ne.s32.totalorder %s2116_s13, %s1539_s18  ;;  %p1544_p9 = scmp.lt.s32.totalorder %s2116_s13, %s2165_s7 }
 0x330   : > { %p1545_p10 = scmp.lt.s32.totalorder %s1543_s21, %s1539_s18 }
 0x331   : > { %p1541_p7 = pnand %p1540_p4, %p1670_p5 }
 0x332   : > { %p1546_p11 = por %p1545_p10, %p1544_p9 }
 0x333   : > { %p1542_p8 = pneg %p1541_p7 }
 0x335   : > { %p1547_p12 = pnand %p1546_p11, %p1542_p8 }
 0x337   : > { %1550 = shalt.err (!%p1547_p12)
}
 0x338   : > { %s1589_s8 = smov 128   ;;  %s1590_s9 = smov 256  }
 0x339   : > { %s1591_s28 = smov 8  }
 0x33a   : > { %1438 = dma.vmem_to_hbm [thread:$0]  (%p1670_p5), %s2111_s23, 512, %s2116_s13, %s2118_s14, %s1589_s8, %s1590_s9, %s1591_s28  }
 0x33b PF: > { %p1444_p13 = scmp.ge.s32.totalorder %s1585_s27, 2  ;;  %s1183_s15 = sand.u32 1, %s1573_s24  }
 0x33c   : > { %s1184_s16 = scalar_lea.sflag [#allocation3], %s1183_s15 }
 0x33d   : > { %p1441_p0 = pnand %p1444_p13, %p1674_p6 }
 0x33f   : > { %p1442_p1 = pneg %p1441_p0 }
 0x341   : > { %1568 = dma.done.wait (%p1442_p1), %s1184_s16, 512  }
 0x342   : > { %1570 = vsyncadd (%p1442_p1), %s1184_s16, 4294966784  ;;  %p17_p2 = scmp.ge.s32.totalorder %s1657_s30, 4   ;;  %s2169_s24 = smov %s1577_s25 }
 0x343   : > { %s2170_s25 = smov %s1581_s26  ;;  %s2171_s26 = smov %s1668_s10 }
 0x344   : > { %s2172_s27 = smov %s1657_s30  ;;  %19 = sbr.rel (!%p17_p2) target bundleno = 3 (0x3), region = 83 }
 0x349   :  { %1189 = vsyncpa [#allocation3], 1 }
 0x34a   :  { %1191 = vsyncpa [#allocation3 + $0x1], 1 }

</bundles_post_ra>
